<compile_context>
chip_gen: v7x
topology: tpu7x:2x2x1
jax: 0.10.0
libtpu: 0.0.40
codegen_flags: <defaults>
</compile_context>

<pallas_src>
import jax
import jax.numpy as jnp
from jax import lax
from jax.experimental import pallas as pl
from jax.experimental.pallas import tpu as pltpu

EPS = 1e-3  # matches nn.BatchNorm2d(..., eps=0.001)


def _conv1x1_fused_kernel(x_ref, w1_ref, b1_ref, w2_ref, b2_ref, o_ref):
    # x_ref : (1, C, TN)   one batch element, one spatial tile (lanes = spatial)
    # w1_ref: (Cr, C)      conv1 weight with BN1 scale folded in (f32)
    # b1_ref: (Cr, 1)      folded BN1 bias (f32)
    # w2_ref: (C, Cr)      conv2 weight with BN2 scale folded in (f32)
    # b2_ref: (C, 1)       folded BN2 bias (f32)
    # o_ref : (1, C, TN)
    x = x_ref[0].astype(jnp.float32)                                    # (C, TN)
    h = jnp.dot(w1_ref[...], x, preferred_element_type=jnp.float32)     # (Cr, TN)
    h = jnp.maximum(h + b1_ref[...], 0.0)                               # BN1 + ReLU
    y = jnp.dot(w2_ref[...], h, preferred_element_type=jnp.float32)     # (C, TN)
    o_ref[0] = (y + b2_ref[...]).astype(o_ref.dtype)                    # BN2


def _pick_spatial_tile(hw):
    # Largest lane-dense tile (multiple of 128) that divides H*W; fall back to full HW.
    for cand in (1024, 512, 256, 128):
        if hw % cand == 0:
            return cand
    return hw


def _fold_bn(weight_oihw, gamma, beta, mean, var, eps=EPS):
    """Fold inference-mode BatchNorm into a 1x1 conv: returns (W_eff, b_eff)."""
    w = weight_oihw[:, :, 0, 0].astype(jnp.float32)        # (O, I)
    scale = gamma.astype(jnp.float32) / jnp.sqrt(var.astype(jnp.float32) + eps)
    w_eff = w * scale[:, None]                             # (O, I)
    b_eff = beta.astype(jnp.float32) - mean.astype(jnp.float32) * scale
    return w_eff, b_eff


def conv1x1_forward(x, w1, w2, bn1_params, bn2_params):
    """Conv1x1.forward equivalent (BatchNorm in inference mode).

    Args:
      x:          (B, C, H, W)
      w1:         (C*ratio, C, 1, 1)   conv1 weight (bias=False)
      w2:         (C, C*ratio, 1, 1)   conv2 weight (bias=False)
      bn1_params: (gamma, beta, running_mean, running_var) each (C*ratio,)
      bn2_params: (gamma, beta, running_mean, running_var) each (C,)
    Returns:
      (B, C, H, W)
    """
    b, c, h, w = x.shape
    cr = w1.shape[0]
    hw = h * w

    # TODO(synk): training-mode BatchNorm (batch statistics) is not implemented;
    # the kernel uses eval-mode running statistics folded into the conv weights.
    w1_eff, b1_eff = _fold_bn(w1, *bn1_params)             # (Cr, C), (Cr,)
    w2_eff, b2_eff = _fold_bn(w2, *bn2_params)             # (C, Cr), (C,)
    b1_eff = b1_eff.reshape(cr, 1)
    b2_eff = b2_eff.reshape(c, 1)

    # NCHW -> (B, C, H*W): pure reshape, no data movement. Spatial = lanes.
    x_flat = x.reshape(b, c, hw)

    tn = _pick_spatial_tile(hw)
    grid = (b, hw // tn)

    # Explicit scoped-VMEM budget: 2x double-buffered in/out tiles + resident weights
    # + intermediate, with headroom; clamped to stay inside v7x's 64 MiB per-core VMEM.
    itemsize = x.dtype.itemsize
    est = (2 * 2 * c * tn * itemsize          # in + out tiles, double buffered
           + 2 * cr * tn * 4                  # f32 intermediate headroom
           + 2 * (cr * c + c * cr + cr + c) * 4)
    vmem_limit = int(min(max(2 * est, 8 * 2 ** 20), 64 * 2 ** 20))

    out_flat = pl.pallas_call(
        _conv1x1_fused_kernel,
        out_shape=jax.ShapeDtypeStruct((b, c, hw), x.dtype),
        grid_spec=pltpu.PrefetchScalarGridSpec(
            num_scalar_prefetch=0,
            grid=grid,
            in_specs=[
                pl.BlockSpec((1, c, tn), lambda bi, ji: (bi, 0, ji)),
                pl.BlockSpec((cr, c), lambda bi, ji: (0, 0)),
                pl.BlockSpec((cr, 1), lambda bi, ji: (0, 0)),
                pl.BlockSpec((c, cr), lambda bi, ji: (0, 0)),
                pl.BlockSpec((c, 1), lambda bi, ji: (0, 0)),
            ],
            out_specs=pl.BlockSpec((1, c, tn), lambda bi, ji: (bi, 0, ji)),
        ),
        compiler_params=pltpu.CompilerParams(
            dimension_semantics=("parallel", "parallel"),
            vmem_limit_bytes=vmem_limit,
        ),
    )(x_flat, w1_eff, b1_eff, w2_eff, b2_eff)

    return out_flat.reshape(b, c, h, w)


def _reference_conv1x1(x, w1, w2, bn1_params, bn2_params, eps=EPS):
    """Pure-JAX reference mirroring the PyTorch module (eval-mode BN)."""
    def bn(y, params):
        g, be, m, v = (p.astype(jnp.float32) for p in params)
        return (y - m[None, :, None, None]) / jnp.sqrt(v + eps)[None, :, None, None] \
               * g[None, :, None, None] + be[None, :, None, None]

    xf = x.astype(jnp.float32)
    y = lax.conv_general_dilated(xf, w1.astype(jnp.float32), (1, 1), "VALID",
                                 dimension_numbers=("NCHW", "OIHW", "NCHW"))
    y = jnp.maximum(bn(y, bn1_params), 0.0)
    y = lax.conv_general_dilated(y, w2.astype(jnp.float32), (1, 1), "VALID",
                                 dimension_numbers=("NCHW", "OIHW", "NCHW"))
    y = bn(y, bn2_params)
    return y.astype(x.dtype)


if __name__ == "__main__":
    key = jax.random.PRNGKey(0)
    keys = jax.random.split(key, 11)

    B, C, RATIO, H, W = 2, 4, 4, 16, 16
    CR = C * RATIO

    x = jax.random.normal(keys[0], (B, C, H, W), dtype=jnp.float32)

    # Conv weights (bias=False in the module).
    w1 = jax.random.normal(keys[1], (CR, C, 1, 1), dtype=jnp.float32) * 0.2
    w2 = jax.random.normal(keys[2], (C, CR, 1, 1), dtype=jnp.float32) * 0.2

    # BatchNorm parameters (inference-mode running stats).
    bn1 = (jax.random.normal(keys[3], (CR,), jnp.float32) * 0.1 + 1.0,   # gamma
           jax.random.normal(keys[4], (CR,), jnp.float32) * 0.1,         # beta
           jax.random.normal(keys[5], (CR,), jnp.float32) * 0.1,         # running_mean
           jnp.abs(jax.random.normal(keys[6], (CR,), jnp.float32)) + 0.5)  # running_var
    bn2 = (jax.random.normal(keys[7], (C,), jnp.float32) * 0.1 + 1.0,
           jax.random.normal(keys[8], (C,), jnp.float32) * 0.1,
           jax.random.normal(keys[9], (C,), jnp.float32) * 0.1,
           jnp.abs(jax.random.normal(keys[10], (C,), jnp.float32)) + 0.5)

    out = conv1x1_forward(x, w1, w2, bn1, bn2)
    out = jax.block_until_ready(out)

    ref = _reference_conv1x1(x, w1, w2, bn1, bn2)
    assert out.shape == (B, C, H, W)
    assert jnp.allclose(out, ref, atol=1e-4, rtol=1e-4), "mismatch vs reference"

    print("KERNEL_OK")
</pallas_src>

<mosaic_0001>
module attributes {stable_mosaic.version = 11 : i64} {
  func.func @_conv1x1_fused_kernel(%arg0: i32, %arg1: i32, %arg2: memref<1x4x256xf32, #tpu.memory_space<vmem>>, %arg3: memref<16x4xf32, #tpu.memory_space<vmem>>, %arg4: memref<16x1xf32, #tpu.memory_space<vmem>>, %arg5: memref<4x16xf32, #tpu.memory_space<vmem>>, %arg6: memref<4x1xf32, #tpu.memory_space<vmem>>, %arg7: memref<1x4x256xf32, #tpu.memory_space<vmem>>) attributes {dimension_semantics = [#tpu.dimension_semantics<parallel>, #tpu.dimension_semantics<parallel>], iteration_bounds = array<i64: 2, 1>, scalar_prefetch = 0 : i64, scratch_operands = 0 : i64, tpu.core_type = #tpu.core_type<tc>, window_params = [{transform_indices = @transform_0, window_bounds = array<i64: 1, 4, 256>}, {pipeline_mode = #tpu.pipeline_mode<synchronous>, transform_indices = @transform_1, window_bounds = array<i64: 16, 4>}, {pipeline_mode = #tpu.pipeline_mode<synchronous>, transform_indices = @transform_2, window_bounds = array<i64: 16, 1>}, {pipeline_mode = #tpu.pipeline_mode<synchronous>, transform_indices = @transform_3, window_bounds = array<i64: 4, 16>}, {pipeline_mode = #tpu.pipeline_mode<synchronous>, transform_indices = @transform_4, window_bounds = array<i64: 4, 1>}, {transform_indices = @transform_5, window_bounds = array<i64: 1, 4, 256>}]} {
    %c0 = arith.constant 0 : index
    %c0_0 = arith.constant 0 : index
    %c0_1 = arith.constant 0 : index
    %0 = vector.load %arg2[%c0, %c0_0, %c0_1] : memref<1x4x256xf32, #tpu.memory_space<vmem>>, vector<1x4x256xf32>
    %1 = vector.shape_cast %0 : vector<1x4x256xf32> to vector<4x256xf32>
    %c0_2 = arith.constant 0 : index
    %c0_3 = arith.constant 0 : index
    %2 = vector.load %arg3[%c0_2, %c0_3] : memref<16x4xf32, #tpu.memory_space<vmem>>, vector<16x4xf32>
    %cst = arith.constant dense<0.000000e+00> : vector<16x256xf32>
    %3 = tpu.matmul %2, %1, %cst {dimension_numbers = #tpu.dot_dimension_numbers<[1], [0], [0], [1], [0, 0, 1, 1], [], []>} : vector<16x4xf32>, vector<4x256xf32>, vector<16x256xf32> -> vector<16x256xf32>
    %c0_4 = arith.constant 0 : index
    %c0_5 = arith.constant 0 : index
    %4 = vector.load %arg4[%c0_4, %c0_5] : memref<16x1xf32, #tpu.memory_space<vmem>>, vector<16x1xf32>
    %5 = vector.broadcast %4 : vector<16x1xf32> to vector<16x256xf32>
    %6 = arith.addf %3, %5 : vector<16x256xf32>
    %cst_6 = arith.constant 0.000000e+00 : f32
    %7 = vector.broadcast %cst_6 : f32 to vector<16x256xf32>
    %8 = arith.maximumf %6, %7 : vector<16x256xf32>
    %c0_7 = arith.constant 0 : index
    %c0_8 = arith.constant 0 : index
    %9 = vector.load %arg5[%c0_7, %c0_8] : memref<4x16xf32, #tpu.memory_space<vmem>>, vector<4x16xf32>
    %cst_9 = arith.constant dense<0.000000e+00> : vector<4x256xf32>
    %10 = tpu.matmul %9, %8, %cst_9 {dimension_numbers = #tpu.dot_dimension_numbers<[1], [0], [0], [1], [0, 0, 1, 1], [], []>} : vector<4x16xf32>, vector<16x256xf32>, vector<4x256xf32> -> vector<4x256xf32>
    %c0_10 = arith.constant 0 : index
    %c0_11 = arith.constant 0 : index
    %11 = vector.load %arg6[%c0_10, %c0_11] : memref<4x1xf32, #tpu.memory_space<vmem>>, vector<4x1xf32>
    %12 = vector.broadcast %11 : vector<4x1xf32> to vector<4x256xf32>
    %13 = arith.addf %10, %12 : vector<4x256xf32>
    %c0_12 = arith.constant 0 : index
    %c0_13 = arith.constant 0 : index
    %c0_14 = arith.constant 0 : index
    %14 = vector.load %arg7[%c0_12, %c0_13, %c0_14] : memref<1x4x256xf32, #tpu.memory_space<vmem>>, vector<1x4x256xf32>
    %15 = vector.shape_cast %14 : vector<1x4x256xf32> to vector<4x256xf32>
    %16 = vector.shape_cast %13 : vector<4x256xf32> to vector<1x4x256xf32>
    tpu.vector_store %arg7[%c0_12, %c0_13, %c0_14], %16 {strides = array<i32>} : memref<1x4x256xf32, #tpu.memory_space<vmem>>, vector<1x4x256xf32>,
    return
  }
  func.func @transform_0(%arg0: i32, %arg1: i32) -> (i32, i32, i32) {
    %c0_i32 = arith.constant 0 : i32
    %c0_i32_0 = arith.constant 0 : i32
    return %arg0, %c0_i32, %arg1 : i32, i32, i32
  }
  func.func @transform_1(%arg0: i32, %arg1: i32) -> (i32, i32) {
    %c0_i32 = arith.constant 0 : i32
    %c0_i32_0 = arith.constant 0 : i32
    %c0_i32_1 = arith.constant 0 : i32
    return %c0_i32, %c0_i32_0 : i32, i32
  }
  func.func @transform_2(%arg0: i32, %arg1: i32) -> (i32, i32) {
    %c0_i32 = arith.constant 0 : i32
    %c0_i32_0 = arith.constant 0 : i32
    %c0_i32_1 = arith.constant 0 : i32
    return %c0_i32, %c0_i32_0 : i32, i32
  }
  func.func @transform_3(%arg0: i32, %arg1: i32) -> (i32, i32) {
    %c0_i32 = arith.constant 0 : i32
    %c0_i32_0 = arith.constant 0 : i32
    %c0_i32_1 = arith.constant 0 : i32
    return %c0_i32, %c0_i32_0 : i32, i32
  }
  func.func @transform_4(%arg0: i32, %arg1: i32) -> (i32, i32) {
    %c0_i32 = arith.constant 0 : i32
    %c0_i32_0 = arith.constant 0 : i32
    %c0_i32_1 = arith.constant 0 : i32
    return %c0_i32, %c0_i32_0 : i32, i32
  }
  func.func @transform_5(%arg0: i32, %arg1: i32) -> (i32, i32, i32) {
    %c0_i32 = arith.constant 0 : i32
    %c0_i32_0 = arith.constant 0 : i32
    return %arg0, %c0_i32, %arg1 : i32, i32, i32
  }
}

</mosaic_0001>

<bundles_post_ra>
// kernel: tpu_custom_call.1
= control target key start
LH: loop header
LB: loop body
LE: loop exit
PB: predicated region body
PF: predicated region fallthrough
CT: control target
= control target key end

     0   :  { %10 = vsyncpa [#allocation3], 0  ;;  %s871_s0 = inlined_call_operand.vmem [shape: f32[2,4,256], index: 0, kind: input, shape index: {}]   ;;  %s872_s1 = inlined_call_operand.vmem [shape: f32[16,4], index: 1, kind: input, shape index: {}]   ;;  %s873_s2 = inlined_call_operand.vmem [shape: f32[16,1], index: 2, kind: input, shape index: {}]   ;;  %s874_s3 = inlined_call_operand.vmem [shape: f32[4,16], index: 3, kind: input, shape index: {}]   ;;  %s875_s4 = inlined_call_operand.vmem [shape: f32[4,1], index: 4, kind: input, shape index: {}]   ;;  %s876_s5 = inlined_call_operand.hbm [shape: f32[2,4,256], index: 5, kind: output, shape index: {}]  }
   0x1   :  { %12 = vsyncpa [#allocation3 + $0x1], 0  ;;  %s741_s18 = smov 0   ;;  %s743_s19 = smov 0  }
   0x2   :  { %s745_s20 = smov 0   ;;  %s747_s21 = smov 0  }
   0x3   :  { %s749_s22 = smov 0   ;;  %s751_s23 = smov 0  }
   0x4 LB: > { %s544_s24 = sadd.s32 4294967295, %s706_s23   ;;  %s545_s25 = sadd.s32 4294967294, %s706_s23   ;;  %s706_s23 = sphi %s751_s23, %s18_s23   ;;  %s702_s22 = sphi %s749_s22, %s883_s22   ;;  %s698_s21 = sphi %s747_s21, %s882_s21   ;;  %s694_s20 = sphi %s745_s20, %s881_s20   ;;  %s690_s19 = sphi %s743_s19, %s880_s19   ;;  %s686_s18 = sphi %s741_s18, %s879_s18  }
   0x5   : > { %s30_s26 = sadd.s32 1, %s702_s22  ;;  %s151_s27 = sadd.s32 1, %s694_s20 }
   0x6   : > { %p32_p0 = scmp.ge.s32.totalorder %s30_s26, 2  ;;  %p161_p1 = scmp.ne.s32.totalorder %s694_s20, %s690_s19 }
   0x7   : > { %p162_p2 = scmp.eq.s32.totalorder %s544_s24, 1  ;;  %p167_p3 = scmp.ne.s32.totalorder %s690_s19, %s686_s18 }
   0x8   : > { %s885_s26 = smov (%p32_p0, %s30_s26), 0  ;;  %p168_p5 = scmp.eq.s32.totalorder %s545_s25, 1 }
   0x9   : > { %p781_p4 = por %p162_p2, %p161_p1  ;;  %s146_s29 = ssub.s32 %s702_s22, %s885_s26 }
   0xa   : > { %p548_p6 = scmp.ge.s32.totalorder %s706_s23, 1  ;;  %p149_p7 = scmp.eq.s32.totalorder %s146_s29, 0 }
   0xb   : > { %p788_p8 = por %p168_p5, %p167_p3  ;;  %p211_p9 = scmp.lt.s32.totalorder %s706_s23, 3 }
   0xc   : > { %s794_s6 = scalar_select %p149_p7, %s694_s20, %s151_s27  }
   0xd   : > { %p212_p10 = pnand %p548_p6, %p211_p9 }
   0xe   : > { %p244_p11 = scmp.lt.s32.totalorder (!%p212_p10), %s698_s21, 1  ;;  %v708_v0 = vmov (!%p212_p10), 0.0   ;;  %v257_v1 = vld [vmem:[%s873_s2] sm:$0xff] (!%p212_p10)  ;;  %v709_v2 = vmov (!%p212_p10), 0   ;;  %v258_v3 = vld [vmem:[%s873_s2 + $0x8] sm:$0xff] (!%p212_p10)  ;;  %vm278_vm0 = vcmask (!%p212_p10), 1043456  }
   0xf   : > { %215 = sbr.rel (%p212_p10) target bundleno = 489 (0x1e9), region = 40  ;;  %347 = vmatprep.mubr.f32.mxu0 (!%p212_p10), %v708_v0  ;;  %439 = vmatprep.mubr.f32.mxu1 (!%p212_p10), %v708_v0  ;;  %v255_v6 = vld [vmem:[%s872_s1] sm:$0xff] (!%p212_p10)  ;;  %vm271_vm1 = vcmask (!%p212_p10), 31744   ;;  %v256_v7 = vld [vmem:[%s872_s1 + $0x8] sm:$0xff] (!%p212_p10)  ;;  %vm371_vm2 = vcmask (!%p212_p10), 130048   ;;  %s563_s11 = sshll.u32 (!%p212_p10), %s698_s21, 7 }
  0x10   : > { %625 = vset.pattern.permute.xlu0 (!%p212_p10), %v709_v2  ;;  %626 = vset.pattern.permute.xlu1 (!%p212_p10), %v709_v2  ;;  %v365_v8 = vld [vmem:[%s875_s4] sm:$0xf] (!%p212_p10)  ;;  %s824_s16 = scalar_lea.hbm (!%p212_p10), %s876_s5, %s563_s11 }
  0x11   : > { %261 = vperm.xlu0 (!%p212_p10), %625, %v257_v1   ;;  %368 = vperm.xlu1 (!%p212_p10), %626, %v365_v8   ;;  %v364_v25 = vld [vmem:[%s874_s3] sm:$0xf] (!%p212_p10) }
  0x15   : > { %266 = vperm.xlu0 (!%p212_p10), %625, %v258_v3  }
  0x16   : > { %s245_s9 = scalar_select %p244_p11, %s698_s21, 1 }
  0x17   : > { %s710_s21 = smov [#allocation2]  }
  0x18   : > { %s562_s10 = sshll.u32 %s245_s9, 3  ;;  %s240_s9 = sand.u32 1, %s690_s19  }
  0x19   : > { %s251_s15 = scalar_lea.vmem %s871_s0, %s562_s10  ;;  %s549_s10 = sshll.u32 %s240_s9, 3 }
  0x1a   : > { %v254_v4 = vld [vmem:[%s251_s15] sm:$0xff]  ;;  %s242_s12 = scalar_lea.vmem [#allocation2], %s549_s10  ;;  %s452_s17 = scalar_lea.sflag [#allocation3], %s240_s9 }
  0x1b   : > { %v270_v5 = vcombine.high %v254_v4, %v254_v4  ;;  %s468_s13 = sshll.u32 %s242_s12, 4  ;;  %s632_s25 = sshll.u32 %s710_s21, 4  ;;  %s826_s13 = int_to_ptr.vmem [resolvable:$true] %s468_s13  ;;  %s633_s25 = int_to_ptr.vmem [resolvable:$false] %s632_s25 }
  0x1c   : > { %s628_s24 = scalar_lea.vmem %s826_s13, 128  ;;  %s634_s27 = scalar_lea.vmem %s633_s25, 256 }
  0x1d   : > { %552 = vmatprep.subr.msk.mxu0 %vm278_vm0, %v270_v5  ;;  %p629_p12 = scmp.ne.s32.totalorder %s826_s13, %s628_s24  ;;  %p635_p1 = scmp.lt.s32.totalorder %s826_s13, %s633_s25 }
  0x1e   : > { %553 = vmatpush1.msk.msra.mxu0 %vm278_vm0, %v254_v4  ;;  %p636_p2 = scmp.lt.s32.totalorder %s634_s27, %s628_s24 }
  0x1f   : > { %554 = vmatmul.mubr.msk.f32.vlgmr.msra.gmra.mrb[0].mxu0 %vm271_vm1, %v255_v6  ;;  %p630_p13 = pnand %p629_p12, %p781_p4 }
  0x20   : > { %353 = vmatprep.mubr.f32.mxu0 %v708_v0  ;;  %p637_p3 = por %p636_p2, %p635_p1 }
  0x21   : > { %p631_p0 = pneg %p630_p13 }
  0x23   : > { %555 = vmatmul.mubr.msk.f32.gmra.mrb[2].mxu0 %vm271_vm1, %v256_v7  ;;  %p638_p5 = pnand %p637_p3, %p631_p0 }
  0x90   : > { %v262_v9 = vpop.permute.xlu0 %261  ;;  %v369_v26 = vpop.permute.xlu1 %368 }
  0x94   : > { %v267_v13 = vpop.permute.xlu0 %266 }
  0xf2   : > { %v349_v10 = vpop.f32.mrb[0].mxu0 }
  0xf3   : > { %v351_v11 = vpop.f32.mrb[1].mxu0  ;;  %v350_v12 = vadd.f32 %v349_v10, %v262_v9 }
  0xf4   : > { %v352_v14 = vadd.f32 %v351_v11, %v262_v9 }
  0xf5   : > { %v360_v19 = vmax.f32 %v350_v12, 0.0 }
  0xf6   : > { %v355_v15 = vpop.f32.mrb[2].mxu0  ;;  %v361_v21 = vmax.f32 %v352_v14, 0.0 }
  0xf7   : > { %v356_v16 = vadd.f32 %v355_v15, %v267_v13  ;;  %v357_v17 = vpop.f32.mrb[3].mxu0 }
  0xf8   : > { %v358_v18 = vadd.f32 %v357_v17, %v267_v13 }
  0xf9   : > { %v362_v20 = vmax.f32 %v356_v16, 0.0 }
  0xfa   : > { %v363_v22 = vmax.f32 %v358_v18, 0.0 }
  0xfb   : > { %v566_v23 = vpack.c.bf16 %v362_v20, %v360_v19 }
  0xfc   : > { %v564_v24 = vpack.c.bf16 %v363_v22, %v361_v21 }
  0xfe   : > { %565 = vmatprep.subr.bf16.mxu1 %v564_v24 }
  0xff   : > { %567 = vmatpush1.bf16.msra.mxu1 %v566_v23 }
 0x102   : > { %556 = vmatmul.mubr.msk.f32.vlgmr.msra.gmra.mrb[0].mxu1 %vm371_vm2, %v364_v25 }
 0x1d5   : > { %v441_v27 = vpop.f32.mrb[0].mxu1 }
 0x1d6   : > { %v442_v28 = vadd.f32 %v441_v27, %v369_v26  ;;  %v443_v29 = vpop.f32.mrb[1].mxu1 }
 0x1d7   : > { %v444_v30 = vadd.f32 %v443_v29, %v369_v26 }
 0x1d9   : > { %v448_v31 = vcombine.low %v442_v28, %v444_v30 }
 0x1db   : > { %450 = vst [vmem:[%s242_s12] sm:$0xff] %v448_v31 }
 0x1dc   : > { %641 = shalt.err (!%p638_p5)
}
 0x1dd   : > { %s642_s29 = scalar_lea.hbm %s824_s16, 128  ;;  %s646_s9 = scalar_lea.hbm %s876_s5, 256 }
 0x1de   : > { %p643_p6 = scmp.ne.s32.totalorder %s824_s16, %s642_s29  ;;  %p647_p10 = scmp.lt.u32.totalorder %s824_s16, %s876_s5 }
 0x1df   : > { %p648_p11 = scmp.lt.u32.totalorder %s646_s9, %s642_s29  ;;  %p650_p13 = scmp.lt.u32.totalorder %s642_s29, %s824_s16 }
 0x1e0   : > { %p644_p7 = pnand %p643_p6, %p781_p4 }
 0x1e1   : > { %p649_p12 = por %p648_p11, %p647_p10 }
 0x1e2   : > { %p645_p9 = pneg %p644_p7 }
 0x1e3   : > { %p651_p0 = por %p650_p13, %p649_p12 }
 0x1e5   : > { %p652_p1 = pnand %p651_p0, %p645_p9 }
 0x1e7   : > { %655 = shalt.err (!%p652_p1)
}
 0x1e8   : > { %568 = dma.vmem_to_hbm [thread:$0]  (%p781_p4), %s826_s13, 128, %s824_s16, %s452_s17  }
 0x1e9 PF: > { %p574_p2 = scmp.ge.s32.totalorder %s706_s23, 2  ;;  %s480_s12 = sand.u32 1, %s686_s18  }
 0x1ea   : > { %s481_s14 = scalar_lea.sflag [#allocation3], %s480_s12 }
 0x1eb   : > { %p571_p3 = pnand %p574_p2, %p788_p8 }
 0x1ed   : > { %681 = dma.done.wait (!%p571_p3), %s481_s14, 128  }
 0x1ee   : > { %683 = vsyncadd (!%p571_p3), %s481_s14, 4294967168  ;;  %s18_s23 = sadd.s32 1, %s706_s23   ;;  %s879_s18 = smov %s690_s19 }
 0x1ef   : > { %p15_p5 = scmp.ge.s32.totalorder %s18_s23, 4   ;;  %s880_s19 = smov %s694_s20 }
 0x1f0   : > { %s881_s20 = smov %s794_s6  ;;  %s882_s21 = smov %s702_s22 }
 0x1f1   : > { %s883_s22 = smov %s885_s26  ;;  %17 = sbr.rel (!%p15_p5) target bundleno = 4 (0x4), region = 75 }
 0x1f8   :  { %486 = vsyncpa [#allocation3], 1 }
 0x1f9   :  { %488 = vsyncpa [#allocation3 + $0x1], 1 }

</bundles_post_ra>
